<compile_context>
chip_gen: v6e
topology: v6e:2x2x1
jax: 0.10.0
libtpu: 0.0.40
codegen_flags: <defaults>
</compile_context>

<pallas_src>
import functools

import jax
import jax.numpy as jnp
from jax.experimental import pallas as pl
from jax.experimental.pallas import tpu as pltpu


def _round_up(x, m):
    return ((x + m - 1) // m) * m


def _cdiv(a, b):
    return -(-a // b)


def _choose_tile_n(n_tokens, vocab, itemsize):
    """Pick a token-tile size giving ~3 MiB of f32 working set per grid step."""
    # sublane granularity of the input dtype (f32: 8, bf16: 16, int8/fp8: 32)
    sub = {4: 8, 2: 16, 1: 32}.get(itemsize, 8)
    target_f32_bytes = 3 * 1024 * 1024
    tn = target_f32_bytes // (vocab * 4)
    tn = int(max(sub, min(1024, tn)))
    if tn >= 128:
        tn = (tn // 128) * 128          # lane-dense output stores
    else:
        tn = max(sub, (tn // sub) * sub)
    tn = min(tn, _round_up(n_tokens, sub))
    # keep at least 2 grid steps when there are enough tokens (v7x: 2 TensorCores)
    if n_tokens >= 2 * sub and _cdiv(n_tokens, tn) < 2:
        tn = max(sub, _round_up(_cdiv(n_tokens, 2), sub))
    return tn


def _label_smoothing_kernel(logits_ref, tgt_ref, mask_ref, loss_ref, *,
                            confidence, smoothing_value, ignore_index):
    logits = logits_ref[...].astype(jnp.float32)        # (tn, V)
    tgt_lane = tgt_ref[0]                               # (1, tn) int32, lane-dense
    valid_lane = mask_ref[0]                            # (1, tn) float32, lane-dense

    tn, v = logits.shape

    # lane -> sublane relayout so the target index broadcasts along the vocab axis
    tgt_col = tgt_lane.reshape(tn, 1)                   # (tn, 1)
    col = jax.lax.broadcasted_iota(jnp.int32, (tn, v), 1)

    # Gather the target logit, the ignore-column logit, row sum and logsumexp.
    x_t = jnp.sum(jnp.where(col == tgt_col, logits, 0.0), axis=-1, keepdims=True)
    x_ign = logits[:, ignore_index:ignore_index + 1]     # (tn, 1) static slice
    sum_x = jnp.sum(logits, axis=-1, keepdims=True)
    m = jnp.max(logits, axis=-1, keepdims=True)
    lse = jnp.log(jnp.sum(jnp.exp(logits - m), axis=-1, keepdims=True)) + m

    # Closed-form label-smoothing cross entropy (rows with tgt != ignore_index):
    #   loss = -(conf * logp_t + sm * (sum_logp - logp_t - logp_ign))
    logp_t = x_t - lse
    logp_ign = x_ign - lse
    sum_logp = sum_x - float(v) * lse
    loss_col = -(confidence * logp_t
                 + smoothing_value * (sum_logp - logp_t - logp_ign))  # (tn, 1)

    # sublane -> lane relayout, then ignore/sequence masking in lane space,
    # lane-dense store.
    loss_lane = loss_col.reshape(1, tn)
    loss_lane = jnp.where(tgt_lane == ignore_index, 0.0, loss_lane)
    loss_ref[0] = loss_lane * valid_lane


def label_smoothing_loss(logits, target, label_lengths, *,
                         label_confidence, ignore_index=0, tile_n=None):
    """Masked per-position label-smoothing loss, shape (B, T) float32."""
    B, T, V = logits.shape
    N = B * T
    label_smoothing = 1.0 - label_confidence
    assert 0.0 < label_smoothing <= 1.0
    assert V > 2
    smoothing_value = label_smoothing / (V - 2)

    itemsize = jnp.dtype(logits.dtype).itemsize
    if tile_n is None:
        tile_n = _choose_tile_n(N, V, itemsize)
    num_tiles = _cdiv(N, tile_n)
    n_pad = num_tiles * tile_n

    # Logits streamed in their native dtype; no wrapper-side pad/cast pass.
    # The (possibly partial) tail block reads unspecified padding rows; those
    # rows are zero-masked and sliced away below.
    logits2 = logits.reshape(N, V)

    # Small side inputs, lane-dense: (num_tiles, 1, tile_n).
    tgt_flat = target.reshape(N).astype(jnp.int32)
    t_idx = jnp.arange(T, dtype=jnp.int32)[None, :]
    mask_flat = (t_idx < label_lengths[:, None].astype(jnp.int32)) \
        .astype(jnp.float32).reshape(N)
    if n_pad != N:
        tgt_flat = jnp.pad(tgt_flat, (0, n_pad - N),
                           constant_values=int(ignore_index))
        mask_flat = jnp.pad(mask_flat, (0, n_pad - N))
    tgt3 = tgt_flat.reshape(num_tiles, 1, tile_n)
    mask3 = mask_flat.reshape(num_tiles, 1, tile_n)

    kernel = functools.partial(
        _label_smoothing_kernel,
        confidence=float(label_confidence),
        smoothing_value=float(smoothing_value),
        ignore_index=int(ignore_index),
    )

    # VMEM budget: double-buffered input tile + a few f32 temporaries, with
    # headroom; capped well under v7x's 64 MiB physical VMEM.
    tile_f32_bytes = tile_n * V * 4
    vmem_limit = int(min(48 * 1024 * 1024,
                         max(16 * 1024 * 1024, 10 * tile_f32_bytes)))

    loss = pl.pallas_call(
        kernel,
        out_shape=jax.ShapeDtypeStruct((num_tiles, 1, tile_n), jnp.float32),
        grid_spec=pltpu.PrefetchScalarGridSpec(
            num_scalar_prefetch=0,
            grid=(num_tiles,),
            in_specs=[
                pl.BlockSpec((tile_n, V), lambda i: (i, 0)),
                pl.BlockSpec((1, 1, tile_n), lambda i: (i, 0, 0)),
                pl.BlockSpec((1, 1, tile_n), lambda i: (i, 0, 0)),
            ],
            out_specs=pl.BlockSpec((1, 1, tile_n), lambda i: (i, 0, 0)),
        ),
        compiler_params=pltpu.CompilerParams(
            dimension_semantics=("parallel",),
            vmem_limit_bytes=vmem_limit),
    )(logits2, tgt3, mask3)

    return loss.reshape(n_pad)[:N].reshape(B, T)


def _reference(logits, target, lengths, label_confidence, ignore_index):
    B, T, V = logits.shape
    sm = (1.0 - label_confidence) / (V - 2)
    col = jnp.arange(V)
    probs = jnp.full((B, T, V), sm, dtype=jnp.float32)
    probs = jnp.where(col[None, None, :] == ignore_index, 0.0, probs)
    probs = jnp.where(col[None, None, :] == target[..., None], label_confidence, probs)
    probs = jnp.where((target == ignore_index)[..., None], 0.0, probs)
    logp = jax.nn.log_softmax(logits.astype(jnp.float32), axis=-1)
    loss = -jnp.sum(probs * logp, axis=-1)
    mask = (jnp.arange(T)[None, :] < lengths[:, None]).astype(jnp.float32)
    return loss * mask


if __name__ == "__main__":
    B, T, V = 2, 8, 32
    label_confidence = 0.9
    ignore_index = 0

    key = jax.random.PRNGKey(0)
    k1, k2 = jax.random.split(key)
    logits = jax.random.normal(k1, (B, T, V), dtype=jnp.float32)
    # Targets include some ignore_index (=0) entries to exercise the masked_fill_ path.
    target = jax.random.randint(k2, (B, T), 0, V, dtype=jnp.int32)
    label_lengths = jnp.array([8, 5], dtype=jnp.int32)

    out = label_smoothing_loss(
        logits, target, label_lengths,
        label_confidence=label_confidence, ignore_index=ignore_index)
    out = jax.block_until_ready(out)

    ref = _reference(logits, target, label_lengths, label_confidence, ignore_index)
    assert out.shape == (B, T)
    assert jnp.allclose(out, ref, atol=1e-5, rtol=1e-5), (out, ref)
    print("KERNEL_OK")
</pallas_src>

<mosaic_0001>
module attributes {stable_mosaic.version = 11 : i64} {
  func.func @_label_smoothing_kernel(%arg0: i32, %arg1: memref<8x32xf32, #tpu.memory_space<vmem>>, %arg2: memref<1x1x8xi32, #tpu.memory_space<vmem>>, %arg3: memref<1x1x8xf32, #tpu.memory_space<vmem>>, %arg4: memref<1x1x8xf32, #tpu.memory_space<vmem>>) attributes {dimension_semantics = [#tpu.dimension_semantics<parallel>], iteration_bounds = array<i64: 2>, scalar_prefetch = 0 : i64, scratch_operands = 0 : i64, tpu.core_type = #tpu.core_type<tc>, window_params = [{transform_indices = @transform_0, window_bounds = array<i64: 8, 32>}, {transform_indices = @transform_1, window_bounds = array<i64: 1, 1, 8>}, {transform_indices = @transform_2, window_bounds = array<i64: 1, 1, 8>}, {transform_indices = @transform_3, window_bounds = array<i64: 1, 1, 8>}]} {
    %c0 = arith.constant 0 : index
    %c0_0 = arith.constant 0 : index
    %0 = vector.load %arg1[%c0, %c0_0] : memref<8x32xf32, #tpu.memory_space<vmem>>, vector<8x32xf32>
    %c0_1 = arith.constant 0 : index
    %c0_2 = arith.constant 0 : index
    %c0_3 = arith.constant 0 : index
    %1 = vector.load %arg2[%c0_1, %c0_2, %c0_3] : memref<1x1x8xi32, #tpu.memory_space<vmem>>, vector<1x1x8xi32>
    %2 = vector.shape_cast %1 : vector<1x1x8xi32> to vector<1x8xi32>
    %c0_4 = arith.constant 0 : index
    %c0_5 = arith.constant 0 : index
    %c0_6 = arith.constant 0 : index
    %3 = vector.load %arg3[%c0_4, %c0_5, %c0_6] : memref<1x1x8xf32, #tpu.memory_space<vmem>>, vector<1x1x8xf32>
    %4 = vector.shape_cast %3 : vector<1x1x8xf32> to vector<1x8xf32>
    %5 = vector.shape_cast %2 : vector<1x8xi32> to vector<8x1xi32>
    %6 = tpu.iota {dimensions = array<i32: 1>} : vector<8x32xi32>
    %7 = vector.broadcast %5 : vector<8x1xi32> to vector<8x32xi32>
    %8 = arith.cmpi eq, %6, %7 : vector<8x32xi32>
    %cst = arith.constant 0.000000e+00 : f32
    %9 = vector.broadcast %cst : f32 to vector<8x32xf32>
    %10 = arith.select %8, %0, %9 : vector<8x32xi1>, vector<8x32xf32>
    %cst_7 = arith.constant dense<0.000000e+00> : vector<8xf32>
    %11 = vector.multi_reduction <add>, %10, %cst_7 [1] : vector<8x32xf32> to vector<8xf32>
    %12 = vector.shape_cast %11 : vector<8xf32> to vector<8x1xf32>
    %13 = vector.extract_strided_slice %0 {offsets = [0, 0], sizes = [8, 1], strides = [1, 1]} : vector<8x32xf32> to vector<8x1xf32>
    %cst_8 = arith.constant dense<0.000000e+00> : vector<8xf32>
    %14 = vector.multi_reduction <add>, %0, %cst_8 [1] : vector<8x32xf32> to vector<8xf32>
    %15 = vector.shape_cast %14 : vector<8xf32> to vector<8x1xf32>
    %cst_9 = arith.constant dense<0xFF800000> : vector<8xf32>
    %16 = vector.multi_reduction <maximumf>, %0, %cst_9 [1] : vector<8x32xf32> to vector<8xf32>
    %17 = vector.shape_cast %16 : vector<8xf32> to vector<8x1xf32>
    %18 = vector.broadcast %17 : vector<8x1xf32> to vector<8x32xf32>
    %19 = arith.subf %0, %18 : vector<8x32xf32>
    %20 = math.exp %19 : vector<8x32xf32>
    %cst_10 = arith.constant dense<0.000000e+00> : vector<8xf32>
    %21 = vector.multi_reduction <add>, %20, %cst_10 [1] : vector<8x32xf32> to vector<8xf32>
    %22 = vector.shape_cast %21 : vector<8xf32> to vector<8x1xf32>
    %23 = math.log %22 : vector<8x1xf32>
    %24 = arith.addf %23, %17 : vector<8x1xf32>
    %25 = arith.subf %12, %24 : vector<8x1xf32>
    %26 = arith.subf %13, %24 : vector<8x1xf32>
    %cst_11 = arith.constant 3.200000e+01 : f32
    %27 = vector.broadcast %cst_11 : f32 to vector<8x1xf32>
    %28 = arith.mulf %27, %24 : vector<8x1xf32>
    %29 = arith.subf %15, %28 : vector<8x1xf32>
    %cst_12 = arith.constant 0.899999976 : f32
    %30 = vector.broadcast %cst_12 : f32 to vector<8x1xf32>
    %31 = arith.mulf %30, %25 : vector<8x1xf32>
    %32 = arith.subf %29, %25 : vector<8x1xf32>
    %33 = arith.subf %32, %26 : vector<8x1xf32>
    %cst_13 = arith.constant 0.00333333341 : f32
    %34 = vector.broadcast %cst_13 : f32 to vector<8x1xf32>
    %35 = arith.mulf %34, %33 : vector<8x1xf32>
    %36 = arith.addf %31, %35 : vector<8x1xf32>
    %cst_14 = arith.constant 0.000000e+00 : f32
    %37 = vector.broadcast %cst_14 : f32 to vector<8x1xf32>
    %38 = arith.subf %37, %36 : vector<8x1xf32>
    %39 = vector.shape_cast %38 : vector<8x1xf32> to vector<1x8xf32>
    %c0_i32 = arith.constant 0 : i32
    %40 = vector.broadcast %c0_i32 : i32 to vector<1x8xi32>
    %41 = arith.cmpi eq, %2, %40 : vector<1x8xi32>
    %cst_15 = arith.constant 0.000000e+00 : f32
    %42 = vector.broadcast %cst_15 : f32 to vector<1x8xf32>
    %43 = arith.select %41, %42, %39 : vector<1x8xi1>, vector<1x8xf32>
    %44 = arith.mulf %43, %4 : vector<1x8xf32>
    %c0_16 = arith.constant 0 : index
    %c0_17 = arith.constant 0 : index
    %c0_18 = arith.constant 0 : index
    %45 = vector.load %arg4[%c0_16, %c0_17, %c0_18] : memref<1x1x8xf32, #tpu.memory_space<vmem>>, vector<1x1x8xf32>
    %46 = vector.shape_cast %45 : vector<1x1x8xf32> to vector<1x8xf32>
    %47 = vector.shape_cast %44 : vector<1x8xf32> to vector<1x1x8xf32>
    tpu.vector_store %arg4[%c0_16, %c0_17, %c0_18], %47 {strides = array<i32>} : memref<1x1x8xf32, #tpu.memory_space<vmem>>, vector<1x1x8xf32>,
    return
  }
  func.func @transform_0(%arg0: i32) -> (i32, i32) {
    %c0_i32 = arith.constant 0 : i32
    %c0_i32_0 = arith.constant 0 : i32
    return %arg0, %c0_i32 : i32, i32
  }
  func.func @transform_1(%arg0: i32) -> (i32, i32, i32) {
    %c0_i32 = arith.constant 0 : i32
    %c0_i32_0 = arith.constant 0 : i32
    %c0_i32_1 = arith.constant 0 : i32
    return %arg0, %c0_i32, %c0_i32_0 : i32, i32, i32
  }
  func.func @transform_2(%arg0: i32) -> (i32, i32, i32) {
    %c0_i32 = arith.constant 0 : i32
    %c0_i32_0 = arith.constant 0 : i32
    %c0_i32_1 = arith.constant 0 : i32
    return %arg0, %c0_i32, %c0_i32_0 : i32, i32, i32
  }
  func.func @transform_3(%arg0: i32) -> (i32, i32, i32) {
    %c0_i32 = arith.constant 0 : i32
    %c0_i32_0 = arith.constant 0 : i32
    %c0_i32_1 = arith.constant 0 : i32
    return %arg0, %c0_i32, %c0_i32_0 : i32, i32, i32
  }
}

</mosaic_0001>

<bundles_post_ra>
// kernel: tpu_custom_call.1
= control target key start
LH: loop header
LB: loop body
LE: loop exit
PB: predicated region body
PF: predicated region fallthrough
CT: control target
= control target key end

     0   :  { %8 = vsyncpa [#allocation3], 0  ;;  %s945_s0 = inlined_call_operand.hbm [shape: f32[16,32], index: 0, kind: input, shape index: {}]   ;;  %s946_s1 = inlined_call_operand.hbm [shape: s32[2,1,8], index: 1, kind: input, shape index: {}]   ;;  %s947_s2 = inlined_call_operand.vmem [shape: f32[2,1,8], index: 2, kind: input, shape index: {}]   ;;  %s948_s3 = inlined_call_operand.hbm [shape: f32[2,1,8], index: 3, kind: output, shape index: {}]  }
   0x1   :  { %10 = vsyncpa [#allocation3 + $0x1], 0 }
   0x2   :  { %11 = vsyncpa [#allocation6], 0 }
   0x3   :  { %13 = vsyncpa [#allocation6 + $0x1], 0 }
   0x4   :  { %14 = vsyncpa [#allocation4], 0 }
   0x5   :  { %16 = vsyncpa [#allocation4 + $0x1], 0  ;;  %s733_s12 = smov 0   ;;  %s735_s13 = smov 0  }
   0x6   :  { %s737_s14 = smov 0   ;;  %s739_s15 = smov 0  }
   0x7 LB: > { %s754_s16 = sadd.s32 4294967295, %s706_s15   ;;  %s510_s17 = sadd.s32 4294967294, %s706_s15   ;;  %s706_s15 = sphi %s739_s15, %s967_s15   ;;  %s702_s14 = sphi %s737_s14, %s966_s14   ;;  %s698_s13 = sphi %s735_s13, %s965_s13   ;;  %s694_s12 = sphi %s733_s12, %s964_s12  }
   0x8   : > { %s758_s18 = sadd.s32 1, %s706_s15   ;;  %s29_s19 = sadd.s32 1, %s702_s14 }
   0x9   : > { %s26_s20 = ssub.s32 %s706_s15, %s758_s18  ;;  %p36_p0 = scmp.ne.s32.totalorder %s702_s14, %s698_s13 }
   0xa   : > { %p27_p1 = scmp.eq.s32.totalorder %s26_s20, 0  ;;  %p37_p2 = scmp.eq.s32.totalorder %s706_s15, 0 }
   0xb   : > { %p42_p3 = scmp.ne.s32.totalorder %s698_s13, %s694_s12  ;;  %p43_p4 = scmp.eq.s32.totalorder %s754_s16, 0 }
   0xc   : > { %s770_s21 = scalar_select %p27_p1, %s702_s14, %s29_s19  }
   0xd   : > { %p772_p5 = por %p37_p2, %p36_p0  ;;  %p776_p6 = por %p43_p4, %p42_p3 }
   0xe   : > { %p118_p7 = scmp.eq.s32.totalorder %s754_s16, 1  ;;  %p124_p8 = scmp.eq.s32.totalorder %s510_s17, 1 }
   0xf   : > { %s952_s23 = scalar_select %p776_p6, 1, 0 }
  0x10   : > { %p540_p10 = scmp.lt.s32.totalorder %s706_s15, 2  ;;  %p783_p11 = por %p118_p7, %p36_p0 }
  0x11   : > { %p787_p12 = por %p124_p8, %p42_p3  ;;  %s792_s26 = sand.u32 1, %s702_s14  }
  0x12   : > { %s953_s24 = scalar_select %p783_p11, 1, 0 }
  0x13   : > { %s954_s25 = scalar_select %p787_p12, 1, 0 }
  0x14   : > { %s514_s27 = sshll.u32 %s706_s15, 7  ;;  %s513_s28 = sshll.u32 %s792_s26, 3 }
  0x15   : > { %s799_s4 = scalar_lea.hbm %s945_s0, %s514_s27  ;;  %s148_s5 = scalar_lea.vmem [#allocation2], %s513_s28 }
  0x16   : > { %s155_s6 = sshll.u32 %s148_s5, 4  ;;  %p803_p13 = pnand %p540_p10, %p772_p5  ;;  %s807_s6 = int_to_ptr.vmem [resolvable:$true] %s155_s6 }
  0x17   : > { %s145_s8 = scalar_lea.sflag [#allocation3], %s792_s26  ;;  %s582_s9 = scalar_lea.hbm %s799_s4, 128 }
  0x18   : > { %p583_p2 = scmp.ne.s32.totalorder %s799_s4, %s582_s9  ;;  %p584_p3 = pneg %p803_p13 }
  0x19   : > { %s587_s17 = scalar_lea.hbm %s945_s0, 256  ;;  %p588_p5 = scmp.lt.s32.totalorder %s799_s4, %s945_s0 }
  0x1a   : > { %p585_p4 = pnand %p584_p3, %p583_p2  ;;  %p589_p8 = scmp.lt.s32.totalorder %s587_s17, %s582_s9 }
  0x1c   : > { %p586_p7 = pneg %p585_p4  ;;  %p590_p10 = por %p589_p8, %p588_p5 }
  0x1e   : > { %p591_p9 = pnand %p590_p10, %p586_p7 }
  0x20   : > { %594 = shalt.err (!%p591_p9)
}
  0x21   : > { %s595_s22 = scalar_lea.vmem %s807_s6, 128  ;;  %s708_s27 = smov [#allocation2]  }
  0x22   : > { %p596_p0 = scmp.ne.s32.totalorder %s807_s6, %s595_s22  ;;  %s600_s28 = sshll.u32 %s708_s27, 4  ;;  %s601_s28 = int_to_ptr.vmem [resolvable:$false] %s600_s28 }
  0x23   : > { %s602_s29 = scalar_lea.vmem %s601_s28, 256  ;;  %p603_p1 = scmp.lt.s32.totalorder %s807_s6, %s601_s28 }
  0x24   : > { %p598_p2 = pnand %p596_p0, %p584_p3  ;;  %p604_p12 = scmp.lt.s32.totalorder %s602_s29, %s595_s22 }
  0x26   : > { %p599_p4 = pneg %p598_p2  ;;  %p605_p11 = por %p604_p12, %p603_p1 }
  0x28   : > { %p606_p5 = pnand %p605_p11, %p599_p4 }
  0x2a   : > { %609 = shalt.err (!%p606_p5)
}
  0x2b   : > { %532 = dma.hbm_to_vmem [thread:$0]  (!%p803_p13), %s799_s4, 128, %s807_s6, %s145_s8  }
  0x2c   : > { %p956_p9 = scmp.lt.s32.totalorder %s706_s15, 3  ;;  %p957_p0 = scmp.ge.s32.totalorder %s706_s15, 1 }
  0x2d   : > { %s515_s5 = sshll.u32 %s706_s15, 4  ;;  %s165_s17 = scalar_lea.vmem [#allocation5], %s792_s26 }
  0x2e   : > { %p840_p7 = pnand %p957_p0, %p956_p9  ;;  %s848_s11 = scalar_lea.hbm %s946_s1, %s515_s5 }
  0x2f   : > { %s172_s19 = sshll.u32 %s165_s17, 4  ;;  %s163_s20 = scalar_lea.sflag [#allocation6], %s792_s26  ;;  %s173_s19 = int_to_ptr.vmem [resolvable:$true] %s172_s19 }
  0x30   : > { %s958_s30 = scalar_select %p840_p7, 1, 0 }
  0x31   : > { %s610_s4 = scalar_lea.hbm %s848_s11, 16  ;;  %s615_s22 = scalar_lea.hbm %s946_s1, 32 }
  0x32   : > { %p611_p11 = scmp.ne.s32.totalorder %s848_s11, %s610_s4  ;;  %p616_p8 = scmp.lt.s32.totalorder %s848_s11, %s946_s1 }
  0x33   : > { %p617_p10 = scmp.lt.s32.totalorder %s615_s22, %s610_s4 }
  0x34   : > { %p613_p12 = pnand %p611_p11, %p584_p3 }
  0x35   : > { %p618_p2 = por %p617_p10, %p616_p8 }
  0x36   : > { %p614_p1 = pneg %p613_p12 }
  0x38   : > { %p619_p4 = pnand %p618_p2, %p614_p1 }
  0x3a   : > { %622 = shalt.err (!%p619_p4)
}
  0x3b   : > { %s623_s29 = scalar_lea.vmem %s173_s19, 16  ;;  %s709_s26 = smov [#allocation5]  }
  0x3c   : > { %p624_p5 = scmp.ne.s32.totalorder %s173_s19, %s623_s29  ;;  %s628_s5 = sshll.u32 %s709_s26, 4  ;;  %s629_s5 = int_to_ptr.vmem [resolvable:$false] %s628_s5 }
  0x3d   : > { %s630_s9 = scalar_lea.vmem %s629_s5, 32  ;;  %p631_p11 = scmp.lt.s32.totalorder %s173_s19, %s629_s5 }
  0x3e   : > { %p626_p9 = pnand %p624_p5, %p584_p3  ;;  %p632_p12 = scmp.lt.s32.totalorder %s630_s9, %s623_s29 }
  0x40   : > { %p627_p0 = pneg %p626_p9  ;;  %p633_p6 = por %p632_p12, %p631_p11 }
  0x42   : > { %p634_p7 = pnand %p633_p6, %p627_p0 }
  0x44   : > { %637 = shalt.err (!%p634_p7)
}
  0x45   : > { %535 = dma.hbm_to_vmem [thread:$0]  (!%p803_p13), %s848_s11, 16, %s173_s19, %s163_s20  }
  0x46   : > { %p959_p1 = scmp.ne.s32.totalorder %s958_s30, 0 }
  0x47   : > { %s873_s10 = sand.u32 (!%p959_p1), 1, %s698_s13   ;;  %p960_p3 = scmp.ne.s32.totalorder (!%p959_p1), %s952_s23, 0 }
  0x48   : > { %187 = sbr.rel (%p959_p1) target bundleno = 573 (0x23d), region = 32  ;;  %s517_s17 = sshll.u32 (!%p959_p1), %s873_s10, 3 }
  0x49   : > { %s190_s4 = scalar_lea.sflag (!%p959_p1), [#allocation3], %s873_s10  ;;  %s193_s6 = scalar_lea.vmem (!%p959_p1), [#allocation2], %s517_s17 }
  0x4d   : > { %681 = dma.done.wait (%p960_p3), %s190_s4, 128  }
  0x4e   : > { %683 = vsyncadd (%p960_p3), %s190_s4, 4294967168  ;;  %s199_s7 = scalar_lea.sflag [#allocation6], %s873_s10  ;;  %s201_s30 = scalar_lea.vmem [#allocation5], %s873_s10 }
  0x4f   : > { %685 = dma.done.wait (%p960_p3), %s199_s7, 16  }
  0x50   : > { %687 = vsyncadd (%p960_p3), %s199_s7, 4294967280  ;;  %vm247_vm0 = vcmask 261120   ;;  %v233_v0 = vld [vmem:[%s193_s6] sm:$0xff]  ;;  %v236_v2 = vlaneseq  ;;  %v710_v17 = vmov 0   ;;  %v711_v25 = vmov 1966171168  }
  0x51   : > { %v254_v1 = vsel %vm247_vm0, %v233_v0, -inf  ;;  %v891_v5 = vld [vmem:[%s201_s30] sm:$0x1]  ;;  %v251_v16 = vsel %vm247_vm0, %v233_v0, 0.0  ;;  %576 = vset.pattern.permute.xlu1 %v710_v17  ;;  %577 = vset.pattern.permute.xlu0 %v710_v17  ;;  %v280_v26 = vunpack.c.l.s4 %v711_v25  ;;  %p230_p6 = scmp.lt.s32.totalorder %s754_s16, 1  ;;  %s520_s8 = sshll.u32 %s754_s16, 4 }
  0x52   : > { %255 = vmax.xlane.f32.xlu0 %v254_v1  ;;  %v888_v3 = vshrl.u32 %v236_v2, 7  ;;  %v894_v10 = vand.u32 127, %v236_v2  ;;  %vm276_vm2 = vcmp.eq.s32.totalorder %v891_v5, 0  ;;  %s229_s22 = scalar_lea.vmem [#allocation7], %s873_s10  ;;  %vm400_vm3 = vcmask 57344   ;;  %s413_s26 = scalar_lea.hbm %s948_s3, %s520_s8 }
  0x53   : > { %v281_v31 = vunpack.c.0.s8 %v280_v26  ;;  %s231_s23 = scalar_select %p230_p6, %s754_s16, 1 }
  0x54   : > { %v238_v4 = vsub.s32 0, %v888_v3  ;;  %v381_v60 = vsub.s32 %v894_v10, %v888_v3  ;;  %s415_s27 = sshll.u32 %s229_s22, 4  ;;  %s403_s5 = scalar_lea.sflag [#allocation4], %s873_s10  ;;  %s416_s27 = int_to_ptr.vmem [resolvable:$true] %s415_s27 }
  0x55   : > { %v284_v35 = vsub.s32 %v281_v31, %v888_v3  ;;  %s232_s20 = scalar_lea.vmem %s947_s2, %s231_s23  ;;  %s638_s9 = scalar_lea.vmem %s416_s27, 16 }
  0x56   : > { %v239_v6 = vrot.slane %v891_v5, %v238_v4  ;;  %p639_p13 = scmp.ne.s32.totalorder %s416_s27, %s638_s9  ;;  %p961_p7 = scmp.ne.s32.totalorder %s953_s24, 0 }
  0x57   : > { %s712_s17 = smov [#allocation7]  }
  0x58   : > { %p640_p8 = pnand %p639_p13, %p961_p7  ;;  %s642_s4 = sshll.u32 %s712_s17, 4  ;;  %s643_s4 = int_to_ptr.vmem [resolvable:$false] %s642_s4 }
  0x59   : > { %s644_s16 = scalar_lea.vmem %s643_s4, 32  ;;  %p645_p2 = scmp.lt.s32.totalorder %s416_s27, %s643_s4 }
  0x5a   : > { %p641_p10 = pneg %p640_p8  ;;  %p646_p4 = scmp.lt.s32.totalorder %s644_s16, %s638_s9 }
  0x5c   : > { %p647_p5 = por %p646_p4, %p645_p2 }
  0x5e   : > { %p648_p9 = pnand %p647_p5, %p641_p10 }
  0x68   : > { %241 = vbcast.lane.b32.xlu0 %v239_v6, 256 }
  0xdb   : > { %v256_v7 = vpop.xlane.xlu0 %255 }
  0xdc   : > { %v257_v8 = vsub.f32 %v233_v0, %v256_v7 }
  0xde   : > { %v258_v9 = vmul.f32 1.442695, %v257_v8 }
  0xdf   : > { %v242_v11 = vpop.permute.xlu0 %241 }
  0xe0   : > { %578 = vpow2.f32 %v258_v9  ;;  %vm245_vm1 = vcmp.eq.s32.totalorder %v894_v10, %v242_v11 }
  0xe1   : > { %v246_v13 = vsel %vm245_vm1, %v233_v0, 0.0 }
  0xe2   : > { %v248_v15 = vsel %vm247_vm0, %v246_v13, 0.0 }
  0xed   : > { %v579_v12 = vpop.eup %578 }
  0xee   : > { %v260_v14 = vsel %vm247_vm0, %v579_v12, 0.0 }
  0xef   : > { %261 = vadd.xlane.f32.xlu1 %v260_v14 }
  0xf3   : > { %249 = vadd.xlane.f32.xlu1 %v248_v15 }
  0xf7   : > { %252 = vadd.xlane.f32.xlu1 %v251_v16 }
 0x178   : > { %v262_v18 = vpop.xlane.xlu1 %261 }
 0x179   : > { %580 = vlog2.f32 %v262_v18 }
 0x17c   : > { %v250_v19 = vpop.xlane.xlu1 %249 }
 0x180   : > { %v253_v23 = vpop.xlane.xlu1 %252 }
 0x186   : > { %v581_v20 = vpop.eup %580 }
 0x187   : > { %v264_v21 = vmul.f32 0.6931472, %v581_v20 }
 0x189   : > { %v265_v22 = vadd.f32 %v264_v21, %v256_v7 }
 0x18b   : > { %v268_v24 = vmul.f32 32.0, %v265_v22  ;;  %v266_v27 = vsub.f32 %v250_v19, %v265_v22  ;;  %v267_v29 = vsub.f32 %v233_v0, %v265_v22  ;;  %v235_v0 = vld [vmem:[%s232_s20] sm:$0x1] }
 0x18d   : > { %v269_v28 = vsub.f32 %v253_v23, %v268_v24  ;;  %v270_v33 = vmul.f32 0.9, %v266_v27 }
 0x18f   : > { %v271_v30 = vsub.f32 %v269_v28, %v266_v27 }
 0x191   : > { %v272_v32 = vsub.f32 %v271_v30, %v267_v29 }
 0x193   : > { %v273_v34 = vmul.f32 0.0033333334, %v272_v32 }
 0x195   : > { %v274_v36 = vadd.f32 %v273_v34, %v270_v33 }
 0x197   : > { %v275_v37 = vsub.f32 0.0, %v274_v36 }
 0x199   : > { %v278_v38 = vcombine.high %v275_v37, %v275_v37  ;;  %v285_v39 = vrot.slane %v275_v37, %v284_v35 }
 0x19b   : > { %v292_v40 = vrot.slane %v278_v38, %v284_v35  ;;  %v293_v41 = vcombine.high %v285_v39, %v285_v39  ;;  %v301_v43 = vrot.slane %v285_v39, %v284_v35 }
 0x19d   : > { %v294_v42 = vcombine.high %v292_v40, %v292_v40  ;;  %v315_v44 = vrot.slane %v293_v41, %v284_v35  ;;  %v308_v45 = vrot.slane %v292_v40, %v284_v35 }
 0x19f   : > { %v322_v46 = vrot.slane %v294_v42, %v284_v35  ;;  %v327_v47 = vcombine.low %v301_v43, %v315_v44  ;;  %v518_v48 = vcombine.high %v301_v43, %v315_v44 }
 0x1a1   : > { %v329_v49 = vcombine.low %v308_v45, %v322_v46  ;;  %v519_v50 = vcombine.high %v308_v45, %v322_v46  ;;  %v337_v51 = vrot.slane %v327_v47, %v284_v35  ;;  %v344_v52 = vrot.slane %v518_v48, %v284_v35 }
 0x1a3   : > { %v351_v53 = vrot.slane %v329_v49, %v284_v35  ;;  %v358_v54 = vrot.slane %v519_v50, %v284_v35  ;;  %v359_v55 = vcombine.low %v337_v51, %v344_v52 }
 0x1a5   : > { %v360_v56 = vcombine.low %v351_v53, %v358_v54  ;;  %v367_v57 = vrot.slane %v359_v55, %v284_v35 }
 0x1a7   : > { %v374_v58 = vrot.slane %v360_v56, %v284_v35 }
 0x1a9   : > { %v375_v59 = vcombine.low %v367_v57, %v374_v58 }
 0x1ab   : > { %377 = vperm.xlu1 %576, %v375_v59  }
 0x226   : > { %v378_v61 = vpop.permute.xlu1 %377 }
 0x227   : > { %v382_v62 = vrot.slane %v378_v61, %v381_v60 }
 0x229   : > { %v389_v63 = vrot.slane %v382_v62, %v284_v35 }
 0x22b   : > { %v396_v1 = vrot.slane %v389_v63, %v284_v35 }
 0x22d   : > { %v398_v2 = vsel %vm276_vm2, 0.0, %v396_v1 }
 0x22e   : > { %v399_v3 = vmul.f32 %v398_v2, %v235_v0 }
 0x230   : > { %401 = vst.msk [vmem:[%s229_s22] sm:$0x1] %vm400_vm3, %v399_v3 }
 0x231   : > { %651 = shalt.err (!%p648_p9)
}
 0x232   : > { %s652_s6 = scalar_lea.hbm %s413_s26, 16  ;;  %s656_s30 = scalar_lea.hbm %s948_s3, 32 }
 0x233   : > { %p653_p0 = scmp.ne.s32.totalorder %s413_s26, %s652_s6  ;;  %p657_p1 = scmp.lt.s32.totalorder %s413_s26, %s948_s3 }
 0x234   : > { %p658_p3 = scmp.lt.s32.totalorder %s656_s30, %s652_s6 }
 0x235   : > { %p654_p11 = pnand %p653_p0, %p961_p7 }
 0x236   : > { %p659_p6 = por %p658_p3, %p657_p1 }
 0x237   : > { %p655_p12 = pneg %p654_p11 }
 0x239   : > { %p660_p13 = pnand %p659_p6, %p655_p12 }
 0x23b   : > { %663 = shalt.err (!%p660_p13)
}
 0x23c   : > { %527 = dma.vmem_to_hbm [thread:$0]  (%p961_p7), %s416_s27, 16, %s413_s26, %s403_s5  }
 0x23d PF: > { %s427_s19 = sand.u32 1, %s694_s12   ;;  %p962_p8 = scmp.ne.s32.totalorder %s954_s25, 0 }
 0x23e   : > { %p963_p10 = scmp.ge.s32.totalorder %s706_s15, 2  ;;  %s428_s20 = scalar_lea.sflag [#allocation4], %s427_s19 }
 0x240   : > { %p537_p2 = pnand %p963_p10, %p962_p8 }
 0x242   : > { %p538_p4 = pneg %p537_p2 }
 0x244   : > { %689 = dma.done.wait (%p538_p4), %s428_s20, 16  }
 0x245   : > { %691 = vsyncadd (%p538_p4), %s428_s20, 4294967280  ;;  %p19_p5 = scmp.ge.s32.totalorder %s758_s18, 4   ;;  %s964_s12 = smov %s698_s13 }
 0x246   : > { %s965_s13 = smov %s702_s14  ;;  %s966_s14 = smov %s770_s21 }
 0x247   : > { %s967_s15 = smov %s758_s18  ;;  %21 = sbr.rel (!%p19_p5) target bundleno = 7 (0x7), region = 93 }
 0x24c   :  { %432 = vsyncpa [#allocation3], 1 }
 0x24d   :  { %434 = vsyncpa [#allocation3 + $0x1], 1 }
 0x24e   :  { %435 = vsyncpa [#allocation6], 1 }
 0x24f   :  { %437 = vsyncpa [#allocation6 + $0x1], 1 }
 0x250   :  { %438 = vsyncpa [#allocation4], 1 }
 0x251   :  { %440 = vsyncpa [#allocation4 + $0x1], 1 }

</bundles_post_ra>
